<compile_context>
chip_gen: v6e
topology: v6e:2x2x1
jax: 0.10.0
libtpu: 0.0.40
codegen_flags: <defaults>
</compile_context>

<pallas_src>
import functools

import jax
import jax.numpy as jnp
from jax.experimental import pallas as pl
from jax.experimental.pallas import tpu as pltpu

ALPHA = 0.5
BETA = 0.5

_LANES = 512  # lane-dense minor dim (multiple of 128)


def _round_up(x, m):
    return ((x + m - 1) // m) * m


def _loss_kernel(x_ref, st_ref, h_ref, acc_ref, *,
                 steps, tile_rows, lanes, acc_sub, full_rows, rem,
                 inv_t, perfect):
    c = pl.program_id(0)   # chunk axis ("parallel": one chunk per TensorCore on v7x)
    i = pl.program_id(1)   # streaming reduction axis ("arbitrary")

    @pl.when(i == 0)
    def _init():
        acc_ref[...] = jnp.zeros_like(acc_ref)

    x = x_ref[...].astype(jnp.float32)    # student logits
    st = st_ref[...].astype(jnp.float32)  # teacher logits
    h = h_ref[...].astype(jnp.float32)    # hard (binary) targets

    # ---- elementwise math: 5 EUP transcendentals per element ---------------
    # sigmoid(x) = 0.5 + 0.5*tanh(x/2)                       (1 tanh)
    # softplus(x) = max(x,0) + log1p(exp(-|x|))
    #             = max(x,0) - log(sigmoid(|x|))
    #             = max(x,0) - log(max(p, 1-p))              (1 log)
    p = 0.5 + 0.5 * jnp.tanh(0.5 * x)                                 # sigmoid(x)
    sp = jnp.maximum(x, 0.0) - jnp.log(jnp.maximum(p, 1.0 - p))       # softplus(x)
    bce = sp - h * x                     # stable BCE(sigmoid(x), h)

    xt = x * inv_t
    pt = 0.5 + 0.5 * jnp.tanh(0.5 * xt)                               # sigmoid(x/T)
    spt = jnp.maximum(xt, 0.0) - jnp.log(jnp.maximum(pt, 1.0 - pt))   # softplus(x/T)
    q = 0.5 + 0.5 * jnp.tanh((0.5 * inv_t) * st)                      # sigmoid(st/T)
    bd = bce + (spt - q * xt)            # fused BCE + distillation-BCE term

    g = tile_rows // acc_sub

    def _vred(v):
        # (tile_rows, lanes) -> (acc_sub, lanes): pure vreg adds, no cross-lane work
        if g == 1:
            return v
        return jnp.sum(v.reshape(g, acc_sub, lanes), axis=0)

    def _accumulate(pv, hv, tpv, bdv):
        acc_ref[0, 0] += _vred(pv)    # sum(sigmoid(x))
        acc_ref[0, 1] += _vred(hv)    # sum(hard_targets)
        acc_ref[0, 2] += _vred(tpv)   # TP / intersection
        acc_ref[0, 3] += _vred(bdv)   # BCE + distillation BCE numerator

    if perfect:
        # Every element of every tile is valid: no iota, no mask, anywhere.
        _accumulate(p, h, p * h, bd)
    else:
        t = c * steps + i                          # logical tile index
        full_tile = (t + 1) * tile_rows <= full_rows

        @pl.when(full_tile)
        def _acc_full():                           # interior tiles: mask-free
            _accumulate(p, h, p * h, bd)

        @pl.when(jnp.logical_not(full_tile))
        def _acc_masked():                         # ragged tail / overhang tiles
            gr = (jax.lax.broadcasted_iota(jnp.int32, (tile_rows, lanes), 0)
                  + t * tile_rows)
            cl = jax.lax.broadcasted_iota(jnp.int32, (tile_rows, lanes), 1)
            valid = (gr < full_rows) | ((gr == full_rows) & (cl < rem))
            z = jnp.float32(0.0)
            # jnp.where (select) is robust even if OOB rows read NaN/Inf garbage.
            _accumulate(jnp.where(valid, p, z), jnp.where(valid, h, z),
                        jnp.where(valid, p * h, z), jnp.where(valid, bd, z))


def bce_dice_tversky_distillation_loss(inputs, soft_targets, hard_targets,
                                       smooth=1e-12, alpha=ALPHA, beta=BETA, T=5):
    x = jnp.ravel(inputs)
    st = jnp.ravel(soft_targets)
    h = jnp.ravel(hard_targets)
    # Stream hard targets narrow: bf16 is exact for 0/1 labels. Floating-point
    # targets keep their HBM dtype (bf16 upstream stays bf16).
    if not jnp.issubdtype(h.dtype, jnp.floating):
        h = h.astype(jnp.bfloat16)

    total = int(x.shape[0])
    lanes = _LANES
    full_rows, rem = divmod(total, lanes)
    rows = full_rows + (1 if rem else 0)

    # Generation-aware tile / VMEM budget.
    kind = jax.devices()[0].device_kind.lower()
    big_vmem = ("v6" in kind) or ("v7" in kind)
    cap = 1024 if big_vmem else 512                 # rows per tile
    vmem_limit = (48 << 20) if big_vmem else (32 << 20)

    tile_rows = rows if rows < 8 else min(cap, _round_up(rows, 8))
    num_tiles = (rows + tile_rows - 1) // tile_rows
    num_chunks = 2 if num_tiles >= 2 else 1         # feeds both TCs on v7x
    steps = (num_tiles + num_chunks - 1) // num_chunks

    acc_sub = 8 if tile_rows % 8 == 0 else tile_rows
    perfect = (rem == 0 and rows % tile_rows == 0
               and num_tiles % num_chunks == 0)

    pad = rows * lanes - total

    def prep(a):
        if pad:                                     # only pad to the lane boundary
            a = jnp.pad(a, (0, pad))
        return a.reshape(rows, lanes)

    x2, st2, h2 = prep(x), prep(st), prep(h)

    if perfect:
        in_map = lambda c, i: (c * steps + i, 0)
    else:
        last_tile = num_tiles - 1
        in_map = lambda c, i: (jnp.minimum(c * steps + i, last_tile), 0)

    kern = functools.partial(
        _loss_kernel, steps=steps, tile_rows=tile_rows, lanes=lanes,
        acc_sub=acc_sub, full_rows=full_rows, rem=rem,
        inv_t=1.0 / float(T), perfect=perfect)

    partials = pl.pallas_call(
        kern,
        out_shape=jax.ShapeDtypeStruct((num_chunks, 4, acc_sub, lanes), jnp.float32),
        grid_spec=pltpu.PrefetchScalarGridSpec(
            num_scalar_prefetch=0,
            grid=(num_chunks, steps),
            in_specs=[pl.BlockSpec((tile_rows, lanes), in_map)] * 3,
            out_specs=pl.BlockSpec((1, 4, acc_sub, lanes),
                                   lambda c, i: (c, 0, 0, 0))),
        compiler_params=pltpu.CompilerParams(
            dimension_semantics=("parallel", "arbitrary"),
            vmem_limit_bytes=vmem_limit),
    )(x2, st2, h2)

    # Tiny cross-lane / cross-chunk reduction + nonlinear loss assembly in XLA.
    sums = jnp.sum(partials, axis=(0, 2, 3))
    sum_p, sum_h, tp, bd_sum = sums[0], sums[1], sums[2], sums[3]
    fp = sum_p - tp                    # sum((1 - h) * p)
    fn = sum_h - tp                    # sum(h * (1 - p))
    dice = 1.0 - (2.0 * tp + smooth) / (sum_p + sum_h + smooth)
    tversky = (tp + smooth) / (tp + alpha * fp + beta * fn + smooth)
    bd_mean = bd_sum / total           # BCE mean + distillation BCE mean
    return 1.0 - tversky + dice + bd_mean


def _reference(inputs, soft_targets, hard_targets, smooth=1e-12,
               alpha=ALPHA, beta=BETA, T=5):
    # Pure-JAX eager mirror of the PyTorch forward.
    x = jnp.ravel(inputs).astype(jnp.float32)
    st = jnp.ravel(soft_targets).astype(jnp.float32)
    h = jnp.ravel(hard_targets).astype(jnp.float32)
    p = jax.nn.sigmoid(x)
    sp_i = jax.nn.sigmoid(x / T)
    sp_t = jax.nn.sigmoid(st / T)
    tp = jnp.sum(p * h)
    fp = jnp.sum((1.0 - h) * p)
    fn = jnp.sum(h * (1.0 - p))
    dice = 1.0 - (2.0 * tp + smooth) / (jnp.sum(p) + jnp.sum(h) + smooth)
    bce = -jnp.mean(h * jnp.log(p) + (1.0 - h) * jnp.log(1.0 - p))
    tversky = (tp + smooth) / (tp + alpha * fp + beta * fn + smooth)
    distill = -jnp.mean(sp_t * jnp.log(sp_i) + (1.0 - sp_t) * jnp.log(1.0 - sp_i))
    return 1.0 - tversky + bce + dice + distill


if __name__ == "__main__":
    key = jax.random.PRNGKey(0)
    k1, k2, k3, k4, k5, k6 = jax.random.split(key, 6)

    # --- small test at the module's natural (B, C, H, W) shape --------------
    B, C, H, W = 2, 4, 16, 16
    inputs = jax.random.normal(k1, (B, C, H, W), dtype=jnp.float32)
    soft_targets = jax.random.normal(k2, (B, C, H, W), dtype=jnp.float32)
    hard_targets = jax.random.uniform(k3, (B, C, H, W)) > 0.5   # bool labels

    loss = bce_dice_tversky_distillation_loss(inputs, soft_targets, hard_targets)
    loss = jax.block_until_ready(loss)
    ref = _reference(inputs, soft_targets, hard_targets)
    if not jnp.allclose(loss, ref, atol=2e-3, rtol=2e-3):
        raise AssertionError(f"small-case mismatch: pallas={loss} ref={ref}")

    # --- ragged multi-tile test (exercises masking + the 2-chunk split) -----
    shape2 = (4, 1, 360, 365)          # 525600 elements, not lane/tile aligned
    inputs2 = jax.random.normal(k4, shape2, dtype=jnp.float32)
    soft2 = jax.random.normal(k5, shape2, dtype=jnp.float32)
    hard2 = jax.random.uniform(k6, shape2) > 0.5

    loss2 = bce_dice_tversky_distillation_loss(inputs2, soft2, hard2)
    loss2 = jax.block_until_ready(loss2)
    ref2 = _reference(inputs2, soft2, hard2)
    if not jnp.allclose(loss2, ref2, atol=2e-3, rtol=2e-3):
        raise AssertionError(f"ragged-case mismatch: pallas={loss2} ref={ref2}")

    print("KERNEL_OK")
</pallas_src>

<mosaic_0001>
module attributes {stable_mosaic.version = 11 : i64} {
  func.func @_loss_kernel(%arg0: i32, %arg1: i32, %arg2: memref<4x512xf32, #tpu.memory_space<vmem>>, %arg3: memref<4x512xf32, #tpu.memory_space<vmem>>, %arg4: memref<4x512xbf16, #tpu.memory_space<vmem>>, %arg5: memref<1x4x4x512xf32, #tpu.memory_space<vmem>>) attributes {dimension_semantics = [#tpu.dimension_semantics<parallel>, #tpu.dimension_semantics<arbitrary>], iteration_bounds = array<i64: 1, 1>, scalar_prefetch = 0 : i64, scratch_operands = 0 : i64, tpu.core_type = #tpu.core_type<tc>, window_params = [{transform_indices = @transform_0, window_bounds = array<i64: 4, 512>}, {transform_indices = @transform_1, window_bounds = array<i64: 4, 512>}, {transform_indices = @transform_2, window_bounds = array<i64: 4, 512>}, {transform_indices = @transform_3, window_bounds = array<i64: 1, 4, 4, 512>}]} {
    %c0_i32 = arith.constant 0 : i32
    %0 = arith.cmpi eq, %arg1, %c0_i32 : i32
    %1 = arith.extui %0 : i1 to i32
    %c0_i32_0 = arith.constant 0 : i32
    %2 = arith.cmpi ne, %1, %c0_i32_0 : i32
    scf.if %2 {
      %cst_48 = arith.constant 0.000000e+00 : f32
      %74 = vector.broadcast %cst_48 : f32 to vector<1x4x4x512xf32>
      %c0_49 = arith.constant 0 : index
      %c0_50 = arith.constant 0 : index
      %c0_51 = arith.constant 0 : index
      %c0_52 = arith.constant 0 : index
      %75 = vector.load %arg5[%c0_49, %c0_50, %c0_51, %c0_52] : memref<1x4x4x512xf32, #tpu.memory_space<vmem>>, vector<1x4x4x512xf32>
      tpu.vector_store %arg5[%c0_49, %c0_50, %c0_51, %c0_52], %74 {strides = array<i32>} : memref<1x4x4x512xf32, #tpu.memory_space<vmem>>, vector<1x4x4x512xf32>,
    } else {
    }
    %c0 = arith.constant 0 : index
    %c0_1 = arith.constant 0 : index
    %3 = vector.load %arg2[%c0, %c0_1] : memref<4x512xf32, #tpu.memory_space<vmem>>, vector<4x512xf32>
    %c0_2 = arith.constant 0 : index
    %c0_3 = arith.constant 0 : index
    %4 = vector.load %arg3[%c0_2, %c0_3] : memref<4x512xf32, #tpu.memory_space<vmem>>, vector<4x512xf32>
    %c0_4 = arith.constant 0 : index
    %c0_5 = arith.constant 0 : index
    %5 = vector.load %arg4[%c0_4, %c0_5] : memref<4x512xbf16, #tpu.memory_space<vmem>>, vector<4x512xbf16>
    %6 = arith.extf %5 : vector<4x512xbf16> to vector<4x512xf32>
    %cst = arith.constant 5.000000e-01 : f32
    %7 = vector.broadcast %cst : f32 to vector<4x512xf32>
    %8 = arith.mulf %7, %3 : vector<4x512xf32>
    %9 = math.tanh %8 : vector<4x512xf32>
    %cst_6 = arith.constant 5.000000e-01 : f32
    %10 = vector.broadcast %cst_6 : f32 to vector<4x512xf32>
    %11 = arith.mulf %10, %9 : vector<4x512xf32>
    %cst_7 = arith.constant 5.000000e-01 : f32
    %12 = vector.broadcast %cst_7 : f32 to vector<4x512xf32>
    %13 = arith.addf %12, %11 : vector<4x512xf32>
    %cst_8 = arith.constant 0.000000e+00 : f32
    %14 = vector.broadcast %cst_8 : f32 to vector<4x512xf32>
    %15 = arith.maximumf %3, %14 : vector<4x512xf32>
    %cst_9 = arith.constant 1.000000e+00 : f32
    %16 = vector.broadcast %cst_9 : f32 to vector<4x512xf32>
    %17 = arith.subf %16, %13 : vector<4x512xf32>
    %18 = arith.maximumf %13, %17 : vector<4x512xf32>
    %19 = math.log %18 : vector<4x512xf32>
    %20 = arith.subf %15, %19 : vector<4x512xf32>
    %21 = arith.mulf %6, %3 : vector<4x512xf32>
    %22 = arith.subf %20, %21 : vector<4x512xf32>
    %cst_10 = arith.constant 2.000000e-01 : f32
    %23 = vector.broadcast %cst_10 : f32 to vector<4x512xf32>
    %24 = arith.mulf %3, %23 : vector<4x512xf32>
    %cst_11 = arith.constant 5.000000e-01 : f32
    %25 = vector.broadcast %cst_11 : f32 to vector<4x512xf32>
    %26 = arith.mulf %25, %24 : vector<4x512xf32>
    %27 = math.tanh %26 : vector<4x512xf32>
    %cst_12 = arith.constant 5.000000e-01 : f32
    %28 = vector.broadcast %cst_12 : f32 to vector<4x512xf32>
    %29 = arith.mulf %28, %27 : vector<4x512xf32>
    %cst_13 = arith.constant 5.000000e-01 : f32
    %30 = vector.broadcast %cst_13 : f32 to vector<4x512xf32>
    %31 = arith.addf %30, %29 : vector<4x512xf32>
    %cst_14 = arith.constant 0.000000e+00 : f32
    %32 = vector.broadcast %cst_14 : f32 to vector<4x512xf32>
    %33 = arith.maximumf %24, %32 : vector<4x512xf32>
    %cst_15 = arith.constant 1.000000e+00 : f32
    %34 = vector.broadcast %cst_15 : f32 to vector<4x512xf32>
    %35 = arith.subf %34, %31 : vector<4x512xf32>
    %36 = arith.maximumf %31, %35 : vector<4x512xf32>
    %37 = math.log %36 : vector<4x512xf32>
    %38 = arith.subf %33, %37 : vector<4x512xf32>
    %cst_16 = arith.constant 1.000000e-01 : f32
    %39 = vector.broadcast %cst_16 : f32 to vector<4x512xf32>
    %40 = arith.mulf %39, %4 : vector<4x512xf32>
    %41 = math.tanh %40 : vector<4x512xf32>
    %cst_17 = arith.constant 5.000000e-01 : f32
    %42 = vector.broadcast %cst_17 : f32 to vector<4x512xf32>
    %43 = arith.mulf %42, %41 : vector<4x512xf32>
    %cst_18 = arith.constant 5.000000e-01 : f32
    %44 = vector.broadcast %cst_18 : f32 to vector<4x512xf32>
    %45 = arith.addf %44, %43 : vector<4x512xf32>
    %46 = arith.mulf %45, %24 : vector<4x512xf32>
    %47 = arith.subf %38, %46 : vector<4x512xf32>
    %48 = arith.addf %22, %47 : vector<4x512xf32>
    %49 = arith.mulf %13, %6 : vector<4x512xf32>
    %c0_19 = arith.constant 0 : index
    %c0_20 = arith.constant 0 : index
    %c0_21 = arith.constant 0 : index
    %c0_22 = arith.constant 0 : index
    %50 = vector.load %arg5[%c0_19, %c0_20, %c0_21, %c0_22] : memref<1x4x4x512xf32, #tpu.memory_space<vmem>>, vector<1x1x4x512xf32>
    %51 = vector.shape_cast %50 : vector<1x1x4x512xf32> to vector<4x512xf32>
    %52 = arith.addf %51, %13 : vector<4x512xf32>
    %c0_23 = arith.constant 0 : index
    %c0_24 = arith.constant 0 : index
    %c0_25 = arith.constant 0 : index
    %c0_26 = arith.constant 0 : index
    %53 = vector.load %arg5[%c0_23, %c0_24, %c0_25, %c0_26] : memref<1x4x4x512xf32, #tpu.memory_space<vmem>>, vector<1x1x4x512xf32>
    %54 = vector.shape_cast %53 : vector<1x1x4x512xf32> to vector<4x512xf32>
    %55 = vector.shape_cast %52 : vector<4x512xf32> to vector<1x1x4x512xf32>
    tpu.vector_store %arg5[%c0_23, %c0_24, %c0_25, %c0_26], %55 {strides = array<i32>} : memref<1x4x4x512xf32, #tpu.memory_space<vmem>>, vector<1x1x4x512xf32>,
    %c0_27 = arith.constant 0 : index
    %c1 = arith.constant 1 : index
    %c0_28 = arith.constant 0 : index
    %c0_29 = arith.constant 0 : index
    %56 = vector.load %arg5[%c0_27, %c1, %c0_28, %c0_29] : memref<1x4x4x512xf32, #tpu.memory_space<vmem>>, vector<1x1x4x512xf32>
    %57 = vector.shape_cast %56 : vector<1x1x4x512xf32> to vector<4x512xf32>
    %58 = arith.addf %57, %6 : vector<4x512xf32>
    %c0_30 = arith.constant 0 : index
    %c1_31 = arith.constant 1 : index
    %c0_32 = arith.constant 0 : index
    %c0_33 = arith.constant 0 : index
    %59 = vector.load %arg5[%c0_30, %c1_31, %c0_32, %c0_33] : memref<1x4x4x512xf32, #tpu.memory_space<vmem>>, vector<1x1x4x512xf32>
    %60 = vector.shape_cast %59 : vector<1x1x4x512xf32> to vector<4x512xf32>
    %61 = vector.shape_cast %58 : vector<4x512xf32> to vector<1x1x4x512xf32>
    tpu.vector_store %arg5[%c0_30, %c1_31, %c0_32, %c0_33], %61 {strides = array<i32>} : memref<1x4x4x512xf32, #tpu.memory_space<vmem>>, vector<1x1x4x512xf32>,
    %c0_34 = arith.constant 0 : index
    %c2 = arith.constant 2 : index
    %c0_35 = arith.constant 0 : index
    %c0_36 = arith.constant 0 : index
    %62 = vector.load %arg5[%c0_34, %c2, %c0_35, %c0_36] : memref<1x4x4x512xf32, #tpu.memory_space<vmem>>, vector<1x1x4x512xf32>
    %63 = vector.shape_cast %62 : vector<1x1x4x512xf32> to vector<4x512xf32>
    %64 = arith.addf %63, %49 : vector<4x512xf32>
    %c0_37 = arith.constant 0 : index
    %c2_38 = arith.constant 2 : index
    %c0_39 = arith.constant 0 : index
    %c0_40 = arith.constant 0 : index
    %65 = vector.load %arg5[%c0_37, %c2_38, %c0_39, %c0_40] : memref<1x4x4x512xf32, #tpu.memory_space<vmem>>, vector<1x1x4x512xf32>
    %66 = vector.shape_cast %65 : vector<1x1x4x512xf32> to vector<4x512xf32>
    %67 = vector.shape_cast %64 : vector<4x512xf32> to vector<1x1x4x512xf32>
    tpu.vector_store %arg5[%c0_37, %c2_38, %c0_39, %c0_40], %67 {strides = array<i32>} : memref<1x4x4x512xf32, #tpu.memory_space<vmem>>, vector<1x1x4x512xf32>,
    %c0_41 = arith.constant 0 : index
    %c3 = arith.constant 3 : index
    %c0_42 = arith.constant 0 : index
    %c0_43 = arith.constant 0 : index
    %68 = vector.load %arg5[%c0_41, %c3, %c0_42, %c0_43] : memref<1x4x4x512xf32, #tpu.memory_space<vmem>>, vector<1x1x4x512xf32>
    %69 = vector.shape_cast %68 : vector<1x1x4x512xf32> to vector<4x512xf32>
    %70 = arith.addf %69, %48 : vector<4x512xf32>
    %c0_44 = arith.constant 0 : index
    %c3_45 = arith.constant 3 : index
    %c0_46 = arith.constant 0 : index
    %c0_47 = arith.constant 0 : index
    %71 = vector.load %arg5[%c0_44, %c3_45, %c0_46, %c0_47] : memref<1x4x4x512xf32, #tpu.memory_space<vmem>>, vector<1x1x4x512xf32>
    %72 = vector.shape_cast %71 : vector<1x1x4x512xf32> to vector<4x512xf32>
    %73 = vector.shape_cast %70 : vector<4x512xf32> to vector<1x1x4x512xf32>
    tpu.vector_store %arg5[%c0_44, %c3_45, %c0_46, %c0_47], %73 {strides = array<i32>} : memref<1x4x4x512xf32, #tpu.memory_space<vmem>>, vector<1x1x4x512xf32>,
    return
  }
  func.func @transform_0(%arg0: i32, %arg1: i32) -> (i32, i32) {
    %c1_i32 = arith.constant 1 : i32
    %0 = arith.muli %arg0, %c1_i32 : i32
    %1 = arith.addi %0, %arg1 : i32
    %c0_i32 = arith.constant 0 : i32
    %c0_i32_0 = arith.constant 0 : i32
    return %1, %c0_i32 : i32, i32
  }
  func.func @transform_1(%arg0: i32, %arg1: i32) -> (i32, i32) {
    %c1_i32 = arith.constant 1 : i32
    %0 = arith.muli %arg0, %c1_i32 : i32
    %1 = arith.addi %0, %arg1 : i32
    %c0_i32 = arith.constant 0 : i32
    %c0_i32_0 = arith.constant 0 : i32
    return %1, %c0_i32 : i32, i32
  }
  func.func @transform_2(%arg0: i32, %arg1: i32) -> (i32, i32) {
    %c1_i32 = arith.constant 1 : i32
    %0 = arith.muli %arg0, %c1_i32 : i32
    %1 = arith.addi %0, %arg1 : i32
    %c0_i32 = arith.constant 0 : i32
    %c0_i32_0 = arith.constant 0 : i32
    return %1, %c0_i32 : i32, i32
  }
  func.func @transform_3(%arg0: i32, %arg1: i32) -> (i32, i32, i32, i32) {
    %c0_i32 = arith.constant 0 : i32
    %c0_i32_0 = arith.constant 0 : i32
    %c0_i32_1 = arith.constant 0 : i32
    %c0_i32_2 = arith.constant 0 : i32
    return %arg0, %c0_i32, %c0_i32_0, %c0_i32_1 : i32, i32, i32, i32
  }
}

</mosaic_0001>

<bundles_post_ra>
// kernel: tpu_custom_call.1
= control target key start
LH: loop header
LB: loop body
LE: loop exit
PB: predicated region body
PF: predicated region fallthrough
CT: control target
= control target key end

     0   :  { %8 = vsyncpa [#allocation3], 0  ;;  %s369_s0 = inlined_call_operand.hbm [shape: f32[4,512], index: 0, kind: input, shape index: {}]   ;;  %s370_s1 = inlined_call_operand.hbm [shape: f32[4,512], index: 1, kind: input, shape index: {}]   ;;  %s371_s2 = inlined_call_operand.hbm [shape: bf16[4,512], index: 2, kind: input, shape index: {}]   ;;  %s372_s3 = inlined_call_operand.hbm [shape: f32[1,4,4,512], index: 3, kind: output, shape index: {}]  }
   0x1   :  { %9 = vsyncpa [#allocation6], 0 }
   0x2   :  { %10 = vsyncpa [#allocation4], 0  ;;  %s304_s12 = smov [#allocation5]   ;;  %s305_s14 = smov [#allocation2]  }
   0x3   :  { %s35_s13 = sshll.u32 %s304_s12, 4  ;;  %s21_s15 = sshll.u32 %s305_s14, 4  ;;  %s36_s13 = int_to_ptr.vmem [resolvable:$true] %s35_s13  ;;  %s22_s15 = int_to_ptr.vmem [resolvable:$true] %s21_s15 }
   0x4   :  { %s226_s16 = scalar_lea.vmem %s36_s13, 256  ;;  %p231_p1 = scmp.lt.s32.totalorder %s36_s13, %s36_s13 }
   0x5   :  { %p227_p0 = scmp.ne.s32.totalorder %s36_s13, %s226_s16  ;;  %p232_p2 = scmp.lt.s32.totalorder %s226_s16, %s226_s16 }
   0x7   :  { %p233_p3 = por %p232_p2, %p231_p1 }
   0x9   :  { %p234_p4 = pnand %p233_p3, %p227_p0 }
   0xb   :  { %237 = shalt.err (!%p234_p4)
}
   0xc   :  { %38 = dma.hbm_to_vmem [thread:$0]  %s370_s1, 256, %s36_s13, [#allocation6]  }
   0xd   :  { %s246_s19 = scalar_lea.vmem %s22_s15, 256  ;;  %p251_p6 = scmp.lt.s32.totalorder %s22_s15, %s22_s15 }
   0xe   :  { %p247_p5 = scmp.ne.s32.totalorder %s22_s15, %s246_s19  ;;  %p252_p7 = scmp.lt.s32.totalorder %s246_s19, %s246_s19 }
  0x10   :  { %p253_p8 = por %p252_p7, %p251_p6 }
  0x12   :  { %p254_p9 = pnand %p253_p8, %p247_p5 }
  0x14   :  { %257 = shalt.err (!%p254_p9)
}
  0x15   :  { %24 = dma.hbm_to_vmem [thread:$0]  %s369_s0, 256, %s22_s15, [#allocation3]  }
  0x16   :  { %s306_s22 = smov [#allocation7]  }
  0x17   :  { %s49_s23 = sshll.u32 %s306_s22, 4  ;;  %s50_s23 = int_to_ptr.vmem [resolvable:$true] %s49_s23 }
  0x18   :  { %s266_s24 = scalar_lea.vmem %s50_s23, 128  ;;  %p271_p11 = scmp.lt.s32.totalorder %s50_s23, %s50_s23 }
  0x19   :  { %p267_p10 = scmp.ne.s32.totalorder %s50_s23, %s266_s24  ;;  %p272_p12 = scmp.lt.s32.totalorder %s266_s24, %s266_s24 }
  0x1b   :  { %p273_p13 = por %p272_p12, %p271_p11 }
  0x1d   :  { %p274_p0 = pnand %p273_p13, %p267_p10 }
  0x1f   :  { %277 = shalt.err (!%p274_p0)
}
  0x20   :  { %52 = dma.hbm_to_vmem [thread:$0]  %s371_s2, 128, %s50_s23, [#allocation6]  }
  0x21   :  { %298 = dma.done.wait [#allocation3], 256  }
  0x22   :  { %299 = vsyncadd [#allocation3], 4294967040 }
  0x23   :  { %300 = dma.done.wait [#allocation6], 384  }
  0x24   :  { %301 = vsyncadd [#allocation6], 4294966912  ;;  %v339_v0 = vld [vmem:[#allocation2] sm:$0xff]  ;;  %v341_v1 = vld [vmem:[#allocation2 + $0x8] sm:$0xff]  ;;  %s307_s0 = smov [#allocation8]  }
  0x25   :  { %v81_v2 = vld [vmem:[#allocation7] sm:$0xff]  ;;  %v84_v3 = vmul.f32 0.5, %v339_v0  ;;  %v85_v4 = vmul.f32 0.5, %v341_v1  ;;  %v348_v7 = vmul.f32 0.2, %v339_v0  ;;  %v79_v11 = vld [vmem:[#allocation5] sm:$0xff] }
  0x26   :  { %v82_v5 = vunpack.c.l.bf16 %v81_v2  ;;  %v345_v6 = vunpack.c.h.bf16 %v81_v2  ;;  %v353_v9 = vmul.f32 0.2, %v341_v1  ;;  %v130_v12 = vmul.f32 0.1, %v79_v11  ;;  %v80_v13 = vld [vmem:[#allocation5 + $0x8] sm:$0xff]  ;;  %s178_s2 = sshll.u32 %s307_s0, 4  ;;  %s179_s2 = int_to_ptr.vmem [resolvable:$true] %s178_s2 }
  0x27   :  { %198 = vtanh.f32 %v84_v3  ;;  %v110_v8 = vmul.f32 0.5, %v348_v7  ;;  %v131_v17 = vmul.f32 0.1, %v80_v13  ;;  %v92_v40 = vmax.f32 %v339_v0, 0.0  ;;  %s278_s26 = scalar_lea.vmem %s179_s2, 1024  ;;  %p283_p2 = scmp.lt.s32.totalorder %s179_s2, %s179_s2 }
  0x28   :  { %200 = vtanh.f32 %v85_v4  ;;  %157 = vst [vmem:[#allocation8 + $0x10] sm:$0xff] %v82_v5  ;;  %158 = vst [vmem:[#allocation8 + $0x18] sm:$0xff] %v345_v6  ;;  %v111_v10 = vmul.f32 0.5, %v353_v9  ;;  %v93_v46 = vmax.f32 %v341_v1, 0.0  ;;  %v104_v47 = vmul.f32 %v82_v5, %v339_v0  ;;  %p279_p1 = scmp.ne.s32.totalorder %s179_s2, %s278_s26  ;;  %p284_p3 = scmp.lt.s32.totalorder %s278_s26, %s278_s26 }
  0x29   :  { %202 = vtanh.f32 %v110_v8  ;;  %v118_v48 = vmax.f32 %v348_v7, 0.0  ;;  %v105_v56 = vmul.f32 %v345_v6, %v341_v1  ;;  %v119_v57 = vmax.f32 %v353_v9, 0.0 }
  0x2a   :  { %204 = vtanh.f32 %v111_v10  ;;  %p285_p4 = por %p284_p3, %p283_p2 }
  0x2b   :  { %206 = vtanh.f32 %v130_v12 }
  0x2c   :  { %208 = vtanh.f32 %v131_v17  ;;  %p286_p5 = pnand %p285_p4, %p279_p1 }
  0x34   :  { %v199_v14 = vpop.eup %198 }
  0x35   :  { %v201_v15 = vpop.eup %200  ;;  %v88_v16 = vmul.f32 0.5, %v199_v14 }
  0x36   :  { %v89_v18 = vmul.f32 0.5, %v201_v15  ;;  %v203_v19 = vpop.eup %202 }
  0x37   :  { %v90_v20 = vadd.f32 0.5, %v88_v16  ;;  %v114_v22 = vmul.f32 0.5, %v203_v19  ;;  %v205_v25 = vpop.eup %204 }
  0x38   :  { %v91_v21 = vadd.f32 0.5, %v89_v18  ;;  %v115_v30 = vmul.f32 0.5, %v205_v25  ;;  %v207_v37 = vpop.eup %206 }
  0x39   :  { %v144_v23 = vmul.f32 %v90_v20, %v82_v5  ;;  %v94_v24 = vsub.f32 1.0, %v90_v20  ;;  %v116_v27 = vadd.f32 0.5, %v114_v22  ;;  %150 = vst [vmem:[#allocation8] sm:$0xff] %v90_v20  ;;  %v209_v38 = vpop.eup %208  ;;  %v134_v39 = vmul.f32 0.5, %v207_v37 }
  0x3a   :  { %v145_v26 = vmul.f32 %v91_v21, %v345_v6  ;;  %v95_v28 = vsub.f32 1.0, %v91_v21  ;;  %151 = vst [vmem:[#allocation8 + $0x8] sm:$0xff] %v91_v21  ;;  %v117_v33 = vadd.f32 0.5, %v115_v30  ;;  %v135_v41 = vmul.f32 0.5, %v209_v38 }
  0x3b   :  { %v96_v29 = vmax.f32 %v90_v20, %v94_v24  ;;  %v120_v31 = vsub.f32 1.0, %v116_v27  ;;  %164 = vst [vmem:[#allocation8 + $0x20] sm:$0xff] %v144_v23  ;;  %v136_v43 = vadd.f32 0.5, %v134_v39 }
  0x3c   :  { %v97_v32 = vmax.f32 %v91_v21, %v95_v28  ;;  %165 = vst [vmem:[#allocation8 + $0x28] sm:$0xff] %v145_v26  ;;  %v121_v35 = vsub.f32 1.0, %v117_v33  ;;  %v137_v52 = vadd.f32 0.5, %v135_v41 }
  0x3d   :  { %210 = vlog2.f32 %v96_v29  ;;  %v122_v34 = vmax.f32 %v116_v27, %v120_v31  ;;  %v138_v54 = vmul.f32 %v136_v43, %v348_v7 }
  0x3e   :  { %212 = vlog2.f32 %v97_v32  ;;  %v123_v36 = vmax.f32 %v117_v33, %v121_v35  ;;  %v139_v62 = vmul.f32 %v137_v52, %v353_v9 }
  0x3f   :  { %214 = vlog2.f32 %v122_v34 }
  0x40   :  { %216 = vlog2.f32 %v123_v36 }
  0x4a   :  { %v211_v42 = vpop.eup %210 }
  0x4b   :  { %v213_v44 = vpop.eup %212  ;;  %v99_v45 = vmul.f32 0.6931472, %v211_v42 }
  0x4c   :  { %v101_v49 = vmul.f32 0.6931472, %v213_v44  ;;  %v215_v50 = vpop.eup %214 }
  0x4d   :  { %v102_v51 = vsub.f32 %v92_v40, %v99_v45  ;;  %v125_v53 = vmul.f32 0.6931472, %v215_v50  ;;  %v217_v58 = vpop.eup %216 }
  0x4e   :  { %v103_v55 = vsub.f32 %v93_v46, %v101_v49  ;;  %v127_v61 = vmul.f32 0.6931472, %v217_v58 }
  0x4f   :  { %v106_v59 = vsub.f32 %v102_v51, %v104_v47  ;;  %v128_v60 = vsub.f32 %v118_v48, %v125_v53 }
  0x50   :  { %v107_v0 = vsub.f32 %v103_v55, %v105_v56  ;;  %v129_v2 = vsub.f32 %v119_v57, %v127_v61 }
  0x51   :  { %v140_v63 = vsub.f32 %v128_v60, %v138_v54 }
  0x52   :  { %v141_v4 = vsub.f32 %v129_v2, %v139_v62 }
  0x53   :  { %v142_v3 = vadd.f32 %v140_v63, %v106_v59 }
  0x54   :  { %v143_v5 = vadd.f32 %v141_v4, %v107_v0 }
  0x55   :  { %171 = vst [vmem:[#allocation8 + $0x30] sm:$0xff] %v142_v3 }
  0x56   :  { %172 = vst [vmem:[#allocation8 + $0x38] sm:$0xff] %v143_v5 }
  0x57   :  { %289 = shalt.err (!%p286_p5)
}
  0x58   :  { %s308_s27 = smov 256   ;;  %s309_s28 = smov 16  }
  0x59   :  { %184 = dma.vmem_to_hbm [thread:$0]  %s179_s2, 1024, %s372_s3, [#allocation4], %s308_s27, %s308_s27, %s309_s28  }
  0x5a   :  { %302 = dma.done.wait [#allocation4], 1024  }
  0x5b   :  { %303 = vsyncadd [#allocation4], 4294966272 }
  0x5c   :  { %188 = vsyncpa [#allocation3], 1 }
  0x5d   :  { %189 = vsyncpa [#allocation6], 1 }
  0x5e   :  { %190 = vsyncpa [#allocation4], 1 }

</bundles_post_ra>
